<compile_context>
chip_gen: v5e
topology: v5e:2x2
jax: 0.10.0
libtpu: 0.0.40
codegen_flags: <defaults>
</compile_context>

<pallas_src>
from typing import NamedTuple

import jax
import jax.numpy as jnp
from jax import lax
from jax.experimental import pallas as pl
from jax.experimental.pallas import tpu as pltpu


def _round_up(x, m):
    return ((x + m - 1) // m) * m


def _sublane_multiple(dtype):
    # Sub-32-bit dtypes pack along sublanes: 8 rows (f32), 16 (bf16), 32 (int8/fp8).
    return {4: 8, 2: 16, 1: 32}.get(jnp.dtype(dtype).itemsize, 8)


# --------------------------------------------------------------------------
# Kernels
# --------------------------------------------------------------------------

def _linear_relu_kernel_noacc(x_ref, w_ref, b_ref, o_ref):
    """relu(x @ w + b); accumulates directly into the resident f32 output tile.

    x_ref : (tm, tk) compute-dtype activation tile
    w_ref : (tk, tn) compute-dtype weight tile, canonical [K, N] layout
    b_ref : (1,  tn) f32 bias tile
    o_ref : (tm, tn) f32 output tile (resident across the k axis)
    """
    k = pl.program_id(2)

    @pl.when(k == 0)
    def _():
        o_ref[...] = jnp.zeros_like(o_ref)

    o_ref[...] += jnp.dot(x_ref[...], w_ref[...],
                          preferred_element_type=jnp.float32)

    @pl.when(k == pl.num_programs(2) - 1)
    def _():
        # TODO(synk): drop_out > 0 (training-mode nn.Dropout) would go here via
        #             pltpu.prng_seed + pltpu.prng_random_bits on this tile.
        o_ref[...] = jnp.maximum(o_ref[...] + b_ref[...], 0.0)


def _linear_relu_kernel_acc(x_ref, w_ref, b_ref, o_ref, acc_ref):
    """Same as above but with an f32 VMEM accumulator (narrow output dtypes)."""
    k = pl.program_id(2)

    @pl.when(k == 0)
    def _():
        acc_ref[...] = jnp.zeros_like(acc_ref)

    acc_ref[...] += jnp.dot(x_ref[...], w_ref[...],
                            preferred_element_type=jnp.float32)

    @pl.when(k == pl.num_programs(2) - 1)
    def _():
        y = acc_ref[...] + b_ref[...]
        o_ref[...] = jnp.maximum(y, 0.0).astype(o_ref.dtype)


# --------------------------------------------------------------------------
# One-time parameter preparation (hoisted out of the per-call hot path)
# --------------------------------------------------------------------------

class LinearParams(NamedTuple):
    w_kn: jax.Array   # (Kp, Np) compute-dtype weight, transposed + padded once
    b_1n: jax.Array   # (1, Np) f32 bias, padded once
    n: int            # original out_features
    k: int            # original in_features
    tn: int
    tk: int


def prepare_linear_params(weight, bias, *, compute_dtype=jnp.bfloat16,
                          tn=1024, tk=512):
    """Pad to tile multiples, transpose to canonical [K, N], cast to compute dtype."""
    N, K = weight.shape
    assert bias.shape == (N,)
    tn = min(tn, _round_up(N, 128))
    tk = min(tk, _round_up(K, 128))
    Np, Kp = _round_up(N, tn), _round_up(K, tk)

    w = weight
    if (Np, Kp) != (N, K):
        w = jnp.pad(w, ((0, Np - N), (0, Kp - K)))
    w_kn = jnp.asarray(w.T, dtype=compute_dtype)          # [Kp, Np]

    b = bias.astype(jnp.float32)
    if Np != N:
        b = jnp.pad(b, (0, Np - N))
    return LinearParams(w_kn=w_kn, b_1n=b.reshape(1, Np), n=N, k=K, tn=tn, tk=tk)


# --------------------------------------------------------------------------
# Forward pass
# --------------------------------------------------------------------------

def linear_forward(x, params: LinearParams, *, tm=512, out_dtype=None,
                   vmem_limit_bytes=None):
    """x: [M, in_features]. Returns relu(x @ weight.T + bias), shape [M, out]."""
    M, K = x.shape
    assert K == params.k
    compute_dtype = params.w_kn.dtype
    if out_dtype is None:
        out_dtype = x.dtype
    tn, tk = params.tn, params.tk
    Kp, Np = params.w_kn.shape

    # Dtype-aware tile shrink for small M (keeps sublane-packed blocks).
    tm = min(tm, _round_up(M, _sublane_multiple(compute_dtype)))
    Mp = _round_up(M, tm)

    x = x.astype(compute_dtype)
    if (Mp, Kp) != (M, K):
        x = jnp.pad(x, ((0, Mp - M), (0, Kp - K)))

    grid = (Mp // tm, Np // tn, Kp // tk)

    use_acc = jnp.dtype(out_dtype) != jnp.dtype(jnp.float32)
    kernel = _linear_relu_kernel_acc if use_acc else _linear_relu_kernel_noacc
    scratch = [pltpu.VMEM((tm, tn), jnp.float32)] if use_acc else []

    in_isz = jnp.dtype(compute_dtype).itemsize
    out_isz = jnp.dtype(out_dtype).itemsize

    # VMEM budget: double-buffered x/w/bias/out tiles (+ resident accumulator).
    vmem_needed = (2 * (tm * tk * in_isz + tk * tn * in_isz + tn * 4
                        + tm * tn * out_isz)
                   + (tm * tn * 4 if use_acc else 0))
    if vmem_limit_bytes is None:
        # Portable across gens: above v5e's 16 MiB scoped default, capped at
        # v7x's 64 MiB physical VMEM per TC.
        vmem_limit_bytes = min(max(int(vmem_needed * 1.25) + (4 << 20), 32 << 20),
                               64 << 20)

    out = pl.pallas_call(
        kernel,
        out_shape=jax.ShapeDtypeStruct((Mp, Np), out_dtype),
        grid_spec=pltpu.PrefetchScalarGridSpec(
            num_scalar_prefetch=0,
            grid=grid,
            in_specs=[
                pl.BlockSpec((tm, tk), lambda i, j, k: (i, k)),   # x
                pl.BlockSpec((tk, tn), lambda i, j, k: (k, j)),   # weight [K, N]
                pl.BlockSpec((1, tn), lambda i, j, k: (0, j)),    # bias
            ],
            out_specs=pl.BlockSpec((tm, tn), lambda i, j, k: (i, j)),
            scratch_shapes=scratch,
        ),
        compiler_params=pltpu.CompilerParams(
            dimension_semantics=("parallel", "parallel", "arbitrary"),
            vmem_limit_bytes=vmem_limit_bytes),
        cost_estimate=pl.CostEstimate(
            flops=2 * Mp * Np * Kp,
            transcendentals=0,
            # Account for block re-reads: x read once per N tile, w once per M tile.
            bytes_accessed=(grid[1] * Mp * Kp * in_isz
                            + grid[0] * Kp * Np * in_isz
                            + Mp * Np * out_isz + Np * 4)),
    )(x, params.w_kn, params.b_1n)

    if (Mp, Np) != (M, params.n):
        out = out[:M, :params.n]
    return out


# --------------------------------------------------------------------------
# Reference + test
# --------------------------------------------------------------------------

def _reference(x, weight, bias, compute_dtype):
    # Mirror the kernel's numerics: inputs rounded to the compute dtype,
    # products/accumulation in f32.
    xr = x.astype(compute_dtype).astype(jnp.float32)
    wr = weight.astype(compute_dtype).astype(jnp.float32)
    y = lax.dot_general(xr, wr, (((1,), (1,)), ((), ())),
                        precision=lax.Precision.HIGHEST) + bias.astype(jnp.float32)
    return jnp.maximum(y, 0.0)


if __name__ == "__main__":
    key = jax.random.PRNGKey(0)

    # (batch, in_f, out_f, compute_dtype, out_dtype, tile overrides, tol)
    cases = [
        # Module-sized toy shape: padding / small-tile path, bf16 compute, f32 out.
        (8, 32, 64, jnp.bfloat16, jnp.float32, {}, 1e-3),
        # Multi-step (2, 2, 2) grid: pipelined direct-into-output accumulation.
        (256, 256, 512, jnp.bfloat16, jnp.float32,
         dict(prep=dict(tn=256, tk=128), fwd=dict(tm=128)), 1e-3),
        # Narrow output dtype: exercises the f32 VMEM accumulator kernel.
        (256, 256, 512, jnp.bfloat16, jnp.bfloat16,
         dict(prep=dict(tn=256, tk=128), fwd=dict(tm=128)), 2e-2),
        # Pure f32 path (no cast), small shape.
        (8, 32, 64, jnp.float32, jnp.float32, {}, 1e-5),
    ]

    for (batch, in_f, out_f, cdt, odt, tiles, tol) in cases:
        key, kx, kw, kb = jax.random.split(key, 4)
        bound = 1.0 / (in_f ** 0.5)
        weight = jax.random.uniform(kw, (out_f, in_f),
                                    minval=-bound, maxval=bound, dtype=jnp.float32)
        bias = jax.random.uniform(kb, (out_f,),
                                  minval=-bound, maxval=bound, dtype=jnp.float32)
        x = jax.random.normal(kx, (batch, in_f), dtype=jnp.float32)

        params = prepare_linear_params(weight, bias, compute_dtype=cdt,
                                       **tiles.get("prep", {}))
        out = linear_forward(x, params, out_dtype=odt, **tiles.get("fwd", {}))
        jax.block_until_ready(out)

        ref = _reference(x, weight, bias, cdt).astype(odt)
        assert out.shape == (batch, out_f)
        assert out.dtype == jnp.dtype(odt)
        err = float(jnp.max(jnp.abs(out.astype(jnp.float32)
                                    - ref.astype(jnp.float32))))
        assert jnp.allclose(out.astype(jnp.float32), ref.astype(jnp.float32),
                            atol=tol, rtol=tol), (
            f"mismatch for shape {(batch, in_f, out_f)} "
            f"compute={cdt}, out={odt}: max abs err {err}")

    print("KERNEL_OK")
</pallas_src>

<mosaic_0001>
module attributes {stable_mosaic.version = 11 : i64} {
  func.func @_linear_relu_kernel_noacc(%arg0: i32, %arg1: i32, %arg2: i32, %arg3: memref<16x128xbf16, #tpu.memory_space<vmem>>, %arg4: memref<128x128xbf16, #tpu.memory_space<vmem>>, %arg5: memref<1x128xf32, #tpu.memory_space<vmem>>, %arg6: memref<16x128xf32, #tpu.memory_space<vmem>>) attributes {dimension_semantics = [#tpu.dimension_semantics<parallel>, #tpu.dimension_semantics<parallel>, #tpu.dimension_semantics<arbitrary>], iteration_bounds = array<i64: 1, 1, 1>, scalar_prefetch = 0 : i64, scratch_operands = 0 : i64, tpu.core_type = #tpu.core_type<tc>, window_params = [{transform_indices = @transform_0, window_bounds = array<i64: 16, 128>}, {transform_indices = @transform_1, window_bounds = array<i64: 128, 128>}, {transform_indices = @transform_2, window_bounds = array<i64: 1, 128>}, {transform_indices = @transform_3, window_bounds = array<i64: 16, 128>}]} {
    %c0_i32 = arith.constant 0 : i32
    %0 = arith.cmpi eq, %arg2, %c0_i32 : i32
    %1 = arith.extui %0 : i1 to i32
    %c0_i32_0 = arith.constant 0 : i32
    %2 = arith.cmpi ne, %1, %c0_i32_0 : i32
    scf.if %2 {
      %cst_10 = arith.constant 0.000000e+00 : f32
      %12 = vector.broadcast %cst_10 : f32 to vector<16x128xf32>
      %c0_11 = arith.constant 0 : index
      %c0_12 = arith.constant 0 : index
      %13 = vector.load %arg6[%c0_11, %c0_12] : memref<16x128xf32, #tpu.memory_space<vmem>>, vector<16x128xf32>
      tpu.vector_store %arg6[%c0_11, %c0_12], %12 {strides = array<i32>} : memref<16x128xf32, #tpu.memory_space<vmem>>, vector<16x128xf32>,
    } else {
    }
    %c0 = arith.constant 0 : index
    %c0_1 = arith.constant 0 : index
    %3 = vector.load %arg6[%c0, %c0_1] : memref<16x128xf32, #tpu.memory_space<vmem>>, vector<16x128xf32>
    %c0_2 = arith.constant 0 : index
    %c0_3 = arith.constant 0 : index
    %4 = vector.load %arg3[%c0_2, %c0_3] : memref<16x128xbf16, #tpu.memory_space<vmem>>, vector<16x128xbf16>
    %c0_4 = arith.constant 0 : index
    %c0_5 = arith.constant 0 : index
    %5 = vector.load %arg4[%c0_4, %c0_5] : memref<128x128xbf16, #tpu.memory_space<vmem>>, vector<128x128xbf16>
    %cst = arith.constant dense<0.000000e+00> : vector<16x128xf32>
    %6 = tpu.matmul %4, %5, %cst {dimension_numbers = #tpu.dot_dimension_numbers<[1], [0], [0], [1], [0, 0, 1, 1], [], []>} : vector<16x128xbf16>, vector<128x128xbf16>, vector<16x128xf32> -> vector<16x128xf32>
    %7 = arith.addf %3, %6 : vector<16x128xf32>
    %c0_6 = arith.constant 0 : index
    %c0_7 = arith.constant 0 : index
    %8 = vector.load %arg6[%c0_6, %c0_7] : memref<16x128xf32, #tpu.memory_space<vmem>>, vector<16x128xf32>
    tpu.vector_store %arg6[%c0_6, %c0_7], %7 {strides = array<i32>} : memref<16x128xf32, #tpu.memory_space<vmem>>, vector<16x128xf32>,
    %c0_i32_8 = arith.constant 0 : i32
    %9 = arith.cmpi eq, %arg2, %c0_i32_8 : i32
    %10 = arith.extui %9 : i1 to i32
    %c0_i32_9 = arith.constant 0 : i32
    %11 = arith.cmpi ne, %10, %c0_i32_9 : i32
    scf.if %11 {
      %c0_10 = arith.constant 0 : index
      %c0_11 = arith.constant 0 : index
      %12 = vector.load %arg6[%c0_10, %c0_11] : memref<16x128xf32, #tpu.memory_space<vmem>>, vector<16x128xf32>
      %c0_12 = arith.constant 0 : index
      %c0_13 = arith.constant 0 : index
      %13 = vector.load %arg5[%c0_12, %c0_13] : memref<1x128xf32, #tpu.memory_space<vmem>>, vector<1x128xf32>
      %14 = vector.broadcast %13 : vector<1x128xf32> to vector<16x128xf32>
      %15 = arith.addf %12, %14 : vector<16x128xf32>
      %cst_14 = arith.constant 0.000000e+00 : f32
      %16 = vector.broadcast %cst_14 : f32 to vector<16x128xf32>
      %17 = arith.maximumf %15, %16 : vector<16x128xf32>
      %c0_15 = arith.constant 0 : index
      %c0_16 = arith.constant 0 : index
      %18 = vector.load %arg6[%c0_15, %c0_16] : memref<16x128xf32, #tpu.memory_space<vmem>>, vector<16x128xf32>
      tpu.vector_store %arg6[%c0_15, %c0_16], %17 {strides = array<i32>} : memref<16x128xf32, #tpu.memory_space<vmem>>, vector<16x128xf32>,
    } else {
    }
    return
  }
  func.func @transform_0(%arg0: i32, %arg1: i32, %arg2: i32) -> (i32, i32) {
    %c0_i32 = arith.constant 0 : i32
    return %arg0, %arg2 : i32, i32
  }
  func.func @transform_1(%arg0: i32, %arg1: i32, %arg2: i32) -> (i32, i32) {
    %c0_i32 = arith.constant 0 : i32
    return %arg2, %arg1 : i32, i32
  }
  func.func @transform_2(%arg0: i32, %arg1: i32, %arg2: i32) -> (i32, i32) {
    %c0_i32 = arith.constant 0 : i32
    %c0_i32_0 = arith.constant 0 : i32
    return %c0_i32, %arg1 : i32, i32
  }
  func.func @transform_3(%arg0: i32, %arg1: i32, %arg2: i32) -> (i32, i32) {
    %c0_i32 = arith.constant 0 : i32
    return %arg0, %arg1 : i32, i32
  }
}

</mosaic_0001>

<bundles_post_ra>
// kernel: tpu_custom_call.1
= control target key start
LH: loop header
LB: loop body
LE: loop exit
PB: predicated region body
PF: predicated region fallthrough
CT: control target
= control target key end

     0   :  { %8 = vsyncpa [#allocation3], 0  ;;  %s351_s0 = inlined_call_operand.hbm [shape: bf16[16,128], index: 0, kind: input, shape index: {}]   ;;  %s352_s1 = inlined_call_operand.hbm [shape: bf16[128,128], index: 1, kind: input, shape index: {}]   ;;  %s353_s2 = inlined_call_operand.vmem [shape: f32[1,128], index: 2, kind: input, shape index: {}]   ;;  %s354_s3 = inlined_call_operand.hbm [shape: f32[16,128], index: 3, kind: output, shape index: {}]  }
   0x1   :  { %9 = vsyncpa [#allocation6], 0 }
   0x2   :  { %10 = vsyncpa [#allocation4], 0  ;;  %s15_s14 = sshll.u32 %s351_s0, 4  ;;  %s312_s15 = smov [#allocation2]   ;;  %s16_s14 = int_to_ptr.hbm [resolvable:$true] %s15_s14 }
   0x3   :  { %s17_s16 = sshll.u32 %s312_s15, 4  ;;  %s28_s19 = sshll.u32 %s352_s1, 4  ;;  %s18_s16 = int_to_ptr.vmem [resolvable:$true] %s17_s16  ;;  %s29_s19 = int_to_ptr.hbm [resolvable:$true] %s28_s19 }
   0x4   :  { %s313_s20 = smov 64   ;;  %s314_s21 = smov 4  }
   0x5   :  { %23 = dma.hbm_to_vmem [thread:$0]  %s16_s14, 128, %s18_s16, [#allocation3], %s313_s20, %s313_s20, %s314_s21  }
   0x6   :  { %s315_s22 = smov [#allocation5]  }
   0x7   :  { %s30_s23 = sshll.u32 %s315_s22, 4  ;;  %s31_s23 = int_to_ptr.vmem [resolvable:$true] %s30_s23 }
   0x8   :  { %36 = dma.hbm_to_vmem [thread:$0]  %s29_s19, 1024, %s31_s23, [#allocation6], %s313_s20, %s313_s20, %s314_s21  }
   0x9   :  { %306 = dma.done.wait [#allocation3], 128  }
   0xa   :  { %307 = vsyncadd [#allocation3], 4294967168 }
   0xb   :  { %308 = dma.done.wait [#allocation6], 1024  }
   0xc   :  { %309 = vsyncadd [#allocation6], 4294966272  ;;  %v224_v0 = vld [vmem:[#allocation5 + $0x38] sm:$0xff]  ;;  %v223_v1 = vld [vmem:[#allocation5 + $0x30] sm:$0xff]  ;;  %s316_s24 = smov [#allocation7]   ;;  %s166_s28 = sshll.u32 %s354_s3, 4  ;;  %s167_s28 = int_to_ptr.hbm [resolvable:$true] %s166_s28 }
   0xd   :  { %127 = vmatpush.bf16.msra.mxu0 %v224_v0  ;;  %v222_v2 = vld [vmem:[#allocation5 + $0x28] sm:$0xff]  ;;  %v221_v3 = vld [vmem:[#allocation5 + $0x20] sm:$0xff]  ;;  %v220_v4 = vld [vmem:[#allocation5 + $0x18] sm:$0xff]  ;;  %s164_s25 = sshll.u32 %s316_s24, 4  ;;  %s317_s29 = smov 128   ;;  %s165_s25 = int_to_ptr.vmem [resolvable:$true] %s164_s25 }
   0xe   :  { %v219_v5 = vld [vmem:[#allocation5 + $0x10] sm:$0xff]  ;;  %v218_v6 = vld [vmem:[#allocation5 + $0x8] sm:$0xff]  ;;  %v217_v7 = vld [vmem:[#allocation5] sm:$0xff]  ;;  %s318_s30 = smov 8  }
   0xf   :  { %v216_v8 = vld [vmem:[#allocation2] sm:$0xff] }
  0x10   :  { %v233_v9 = vld [vmem:[%s353_s2] ss:$0 sm:$0xff] }
  0x11   :  { %128 = vmatpush.bf16.msra.mxu0 %v223_v1 }
  0x15   :  { %129 = vmatpush.bf16.msra.mxu0 %v222_v2 }
  0x19   :  { %130 = vmatpush.bf16.msra.mxu0 %v221_v3 }
  0x1d   :  { %131 = vmatpush.bf16.msra.mxu0 %v220_v4 }
  0x21   :  { %132 = vmatpush.bf16.msra.mxu0 %v219_v5 }
  0x25   :  { %133 = vmatpush.bf16.msra.mxu0 %v218_v6 }
  0x29   :  { %134 = vmatpush.bf16.msra.mxu0 %v217_v7 }
  0x2c   :  { %135 = vmatmul.bf16.vlgmr.msra.gmra.mxu0 %v216_v8 }
  0xa9   :  { %v136_v10 = vpop.f32.mrf.mxu0 }
  0xaa   :  { %v154_v11 = vadd.f32 %v233_v9, %v136_v10 }
  0xac   :  { %v156_v12 = vmax.f32 %v154_v11, 0.0 }
  0xae   :  { %158 = vst [vmem:[#allocation7] sm:$0xff] %v156_v12 }
  0xb1   :  { %v138_v13 = vpop.f32.mrf.mxu0 }
  0xb2   :  { %v155_v14 = vadd.f32 %v233_v9, %v138_v13 }
  0xb4   :  { %v157_v15 = vmax.f32 %v155_v14, 0.0 }
  0xb6   :  { %159 = vst [vmem:[#allocation7 + $0x8] sm:$0xff] %v157_v15 }
  0xb7   :  { %172 = dma.vmem_to_hbm [thread:$0]  %s165_s25, 256, %s167_s28, [#allocation4], %s317_s29, %s317_s29, %s318_s30  }
  0xb8   :  { %310 = dma.done.wait [#allocation4], 256  }
  0xb9   :  { %311 = vsyncadd [#allocation4], 4294967040 }
  0xba   :  { %177 = vsyncpa [#allocation3], 1 }
  0xbb   :  { %178 = vsyncpa [#allocation6], 1 }
  0xbc   :  { %179 = vsyncpa [#allocation4], 1 }

</bundles_post_ra>
